<compile_context>
chip_gen: v6e
topology: v6e:2x2x1
jax: 0.10.0
libtpu: 0.0.40
codegen_flags: <defaults>
</compile_context>

<pallas_src>
import jax
import jax.numpy as jnp
from jax.experimental import pallas as pl
from jax.experimental.pallas import tpu as pltpu


def _wspec(shape):
    nd = len(shape)
    return pl.BlockSpec(shape, lambda b, t, _nd=nd: (0,) * _nd)


def _make_fused_kernel(*, TL, L1, L2, L_pad, Cout, use_maxpool, use_skip_convs,
                       x1_halo, x2_halo, compute_dtype):
    """Fused UnResBlk forward for one (batch, length-tile) grid step."""
    mask_d = L1 < L_pad          # direct path shorter than the padded length
    mask_s = L2 < L_pad          # skip path shorter than the padded length
    cd = compute_dtype

    def kernel(*refs):
        it = iter(refs)
        x1_ref = next(it)
        x1_prev = next(it) if x1_halo else None
        x1_next = next(it) if x1_halo else None
        x2_ref = next(it)
        x2_prev = next(it) if x2_halo else None
        x2_next = next(it) if x2_halo else None
        w1_ref = next(it)        # (Cin, Cmid)   Conv1d(k=1), BN scale folded in
        shift_ref = next(it)     # (1, Cmid)     conv bias + BN shift folded
        wcat_ref = next(it)      # (Cmid, 3Cout) ConvTranspose1d(k=3) taps, lane-concat
        bt_ref = next(it)        # (1, Cout)
        if use_skip_convs:
            ws_ref = next(it)    # (C2, Cout)    both skip 1x1 convs composed
            bs_ref = next(it)    # (1, Cout)
        wd2_ref = next(it)       # (Cout, Cout)  ConvTranspose1d(k=1)
        bd2_ref = next(it)       # (1, Cout)
        lower_ref = next(it)
        upper_ref = next(it)

        t = pl.program_id(1)
        start = t * TL
        gpos = start + jax.lax.broadcasted_iota(jnp.int32, (TL, 1), 0)

        # ------------------------- direct path ------------------------------
        # Conv1d(k=1) + folded BatchNorm(eval) + ReLU.
        x1 = x1_ref[0].astype(cd)                                   # (TL, Cin)
        h = jnp.dot(x1, w1_ref[...], preferred_element_type=jnp.float32)
        h = jnp.maximum(h + shift_ref[...], 0.0)
        if mask_d:
            h = jnp.where(gpos < L1, h, 0.0)                        # rows past real x1 length
        # TODO(synk): Dropout(p=0.2) is stochastic in train mode; eval-mode identity here.

        # ConvTranspose1d(k=3, p=1): d[j] = h[j+1]@W0 + h[j]@W1 + h[j-1]@W2 + bt
        # One MXU push against the lane-concatenated (Cmid, 3*Cout) weight.
        p = jnp.dot(h.astype(cd), wcat_ref[...], preferred_element_type=jnp.float32)
        p0, p1, p2 = p[:, :Cout], p[:, Cout:2 * Cout], p[:, 2 * Cout:]

        if x1_halo:
            # One row of h from each neighbouring tile (clamped 8-row blocks;
            # invalid at sequence edges / beyond the real length -> masked 0).
            def h_row(row):
                r = jnp.dot(row.astype(cd), w1_ref[...],
                            preferred_element_type=jnp.float32)
                return jnp.maximum(r + shift_ref[...], 0.0)
            hp = h_row(x1_prev[0, 7:8, :])                          # x1[start-1]
            hn = h_row(x1_next[0, 0:1, :])                          # x1[start+TL]
            hp = jnp.where((start > 0) & (start - 1 < L1), hp, 0.0)
            hn = jnp.where(start + TL < L1, hn, 0.0)
            prev_row = jnp.dot(hp.astype(cd), wcat_ref[...],
                               preferred_element_type=jnp.float32)[:, 2 * Cout:]
            next_row = jnp.dot(hn.astype(cd), wcat_ref[...],
                               preferred_element_type=jnp.float32)[:, :Cout]
        else:
            prev_row = jnp.zeros((1, Cout), jnp.float32)
            next_row = jnp.zeros((1, Cout), jnp.float32)

        up = jnp.concatenate([p0[1:], next_row], axis=0)            # up[j] = p0[j+1]
        dn = jnp.concatenate([prev_row, p2[:-1]], axis=0)           # dn[j] = p2[j-1]
        d = p1 + up + dn + bt_ref[...]
        if mask_d:
            d = jnp.where(gpos < L1, d, 0.0)                        # ConstantPad1d(0)

        # -------------------------- skip path -------------------------------
        s = x2_ref[0]                                               # (TL, C2), f32
        if use_maxpool:
            if mask_s:
                s = jnp.where(gpos < L2, s, -jnp.inf)               # implicit -inf pad
            if x2_halo:
                pr = x2_prev[0, 7:8, :]
                nx = x2_next[0, 0:1, :]
                pr = jnp.where((start > 0) & (start - 1 < L2), pr, -jnp.inf)
                nx = jnp.where(start + TL < L2, nx, -jnp.inf)
            else:
                pr = jnp.full((1, s.shape[1]), -jnp.inf, jnp.float32)
                nx = jnp.full((1, s.shape[1]), -jnp.inf, jnp.float32)
            xm1 = jnp.concatenate([pr, s[:-1]], axis=0)             # x2[j-1]
            xp1 = jnp.concatenate([s[1:], nx], axis=0)              # x2[j+1]
            s = jnp.maximum(jnp.maximum(xm1, s), xp1)               # MaxPool1d(3,1,1)
            if mask_s:
                s = jnp.where(gpos < L2, s, 0.0)                    # keep -inf off the MXU
        if use_skip_convs:
            s = jnp.dot(s.astype(cd), ws_ref[...],
                        preferred_element_type=jnp.float32) + bs_ref[...]
            if mask_s:
                s = jnp.where(gpos < L2, s, 0.0)                    # ConstantPad1d(0)

        # -------------------- residual add + direct_path2 -------------------
        u = d + s
        lower = jnp.dot(u.astype(cd), wd2_ref[...],
                        preferred_element_type=jnp.float32) + bd2_ref[...]
        upper_ref[0] = u.astype(upper_ref.dtype)
        lower_ref[0] = lower.astype(lower_ref.dtype)

    return kernel


class UnResBlkPallas:
    CMID = 64   # hidden width of direct_path1 (Conv1d(..., 64, k=1) + BN(64))

    def __init__(self, in_channels, out_channels=64, n_samples_in=1000,
                 n_samples_out=1000, key=None, compute_dtype=jnp.bfloat16,
                 tile_len=512):
        if key is None:
            key = jax.random.PRNGKey(0)
        self.in_channels = in_channels
        self.out_channels = out_channels
        self.downsample = n_samples_in // n_samples_out
        self.use_maxpool = self.downsample > 1
        self.use_skip_convs = in_channels != out_channels
        self.compute_dtype = compute_dtype
        self.tile_len = tile_len
        Cmid, Cin, Cout = self.CMID, in_channels, out_channels
        ks = jax.random.split(key, 12)

        def init(k, shape, scale=0.1):
            return (scale * jax.random.normal(k, shape)).astype(jnp.float32)

        # ----- f32 master parameters (used by the pure-JAX reference) --------
        w1 = init(ks[0], (Cin, Cmid))            # Conv1d(Cin,64,k=1), stored for x @ W
        b1 = init(ks[1], (Cmid,))
        gamma = 1.0 + init(ks[2], (Cmid,))
        beta = init(ks[3], (Cmid,))
        mean = jnp.zeros((Cmid,), jnp.float32)
        var = jnp.ones((Cmid,), jnp.float32)
        eps = 1e-5
        wt = init(ks[4], (Cmid, Cout, 3))        # ConvTranspose1d(64,Cout,k=3,p=1)
        bt = init(ks[5], (1, Cout))
        wd2 = init(ks[10], (Cout, Cout))         # ConvTranspose1d(Cout,Cout,k=1)
        bd2 = init(ks[11], (1, Cout))
        self._ref = dict(w1=w1, b1=b1, gamma=gamma, beta=beta, mean=mean,
                         var=var, eps=eps, wt=wt, bt=bt, wd2=wd2, bd2=bd2)
        if self.use_skip_convs:
            ws1 = init(ks[6], (2 * Cin, Cout))
            bs1 = init(ks[7], (1, Cout))
            ws2 = init(ks[8], (Cout, Cout))
            bs2 = init(ks[9], (1, Cout))
            self._ref.update(ws1=ws1, bs1=bs1, ws2=ws2, bs2=bs2)

        # ----- algebraic folds (once, in f32), then cast for the MXU ---------
        scale = gamma * jax.lax.rsqrt(var + eps)
        self.w1f = (w1 * scale[None, :]).astype(compute_dtype)         # BN scale into conv
        self.shift = ((b1 - mean) * scale + beta).reshape(1, Cmid)      # bias + BN shift
        self.wcat = jnp.concatenate([wt[:, :, 0], wt[:, :, 1], wt[:, :, 2]],
                                    axis=1).astype(compute_dtype)       # (Cmid, 3*Cout)
        self.bt = bt
        if self.use_skip_convs:
            self.ws_fold = (ws1 @ ws2).astype(compute_dtype)            # two 1x1 convs compose
            self.bs_fold = bs1 @ ws2 + bs2
        self.wd2 = wd2.astype(compute_dtype)
        self.bd2 = bd2

    # ---- tiling ---------------------------------------------------------------

    def _pick_tiles(self, Lmax):
        cap = max(8, self.tile_len - self.tile_len % 8)
        if Lmax <= cap:
            return Lmax, Lmax                       # single tile (block == full dim)
        for d in range(cap, 7, -8):                 # largest /8 divisor of Lmax <= cap
            if Lmax % d == 0:
                return d, Lmax
        return cap, pl.cdiv(Lmax, cap) * cap        # pad length up to a tile multiple

    # ---- forward --------------------------------------------------------------

    def __call__(self, x1_ncl, x2_ncl):
        # PyTorch NCL -> NLC at the boundary (glue).
        x1 = jnp.transpose(x1_ncl, (0, 2, 1)).astype(jnp.float32)
        x2 = jnp.transpose(x2_ncl, (0, 2, 1)).astype(jnp.float32)
        B, L1, Cin = x1.shape
        B2, L2, C2 = x2.shape
        assert B2 == B and Cin == self.in_channels
        assert C2 == (2 * self.in_channels if self.use_skip_convs else self.out_channels)
        Cout = self.out_channels

        Lmax = max(L1, L2)
        TL, L_pad = self._pick_tiles(Lmax)
        nT = L_pad // TL
        if L1 < L_pad:
            x1 = jnp.pad(x1, ((0, 0), (0, L_pad - L1), (0, 0)))
        if L2 < L_pad:
            x2 = jnp.pad(x2, ((0, 0), (0, L_pad - L2), (0, 0)))

        x1_halo = nT > 1
        x2_halo = (nT > 1) and self.use_maxpool
        R = TL // 8 if nT > 1 else 1        # main-tile size in 8-row halo blocks
        NR = L_pad // 8 if nT > 1 else 1    # number of 8-row halo blocks

        kernel = _make_fused_kernel(
            TL=TL, L1=L1, L2=L2, L_pad=L_pad, Cout=Cout,
            use_maxpool=self.use_maxpool, use_skip_convs=self.use_skip_convs,
            x1_halo=x1_halo, x2_halo=x2_halo, compute_dtype=self.compute_dtype)

        in_specs = [pl.BlockSpec((1, TL, Cin), lambda b, t: (b, t, 0))]
        args = [x1]
        if x1_halo:
            in_specs += [
                pl.BlockSpec((1, 8, Cin),
                             lambda b, t: (b, jnp.maximum(t * R - 1, 0), 0)),
                pl.BlockSpec((1, 8, Cin),
                             lambda b, t: (b, jnp.minimum((t + 1) * R, NR - 1), 0)),
            ]
            args += [x1, x1]
        in_specs.append(pl.BlockSpec((1, TL, C2), lambda b, t: (b, t, 0)))
        args.append(x2)
        if x2_halo:
            in_specs += [
                pl.BlockSpec((1, 8, C2),
                             lambda b, t: (b, jnp.maximum(t * R - 1, 0), 0)),
                pl.BlockSpec((1, 8, C2),
                             lambda b, t: (b, jnp.minimum((t + 1) * R, NR - 1), 0)),
            ]
            args += [x2, x2]

        w_args = [self.w1f, self.shift, self.wcat, self.bt]
        if self.use_skip_convs:
            w_args += [self.ws_fold, self.bs_fold]
        w_args += [self.wd2, self.bd2]
        in_specs += [_wspec(w.shape) for w in w_args]
        args += w_args

        out_shape = (jax.ShapeDtypeStruct((B, L_pad, Cout), jnp.float32),
                     jax.ShapeDtypeStruct((B, L_pad, Cout), jnp.float32))
        out_specs = (pl.BlockSpec((1, TL, Cout), lambda b, t: (b, t, 0)),
                     pl.BlockSpec((1, TL, Cout), lambda b, t: (b, t, 0)))

        lower, upper = pl.pallas_call(
            kernel,
            out_shape=out_shape,
            grid=(B, nT),
            in_specs=in_specs,
            out_specs=out_specs,
            compiler_params=pltpu.CompilerParams(
                dimension_semantics=("parallel", "parallel"),
                vmem_limit_bytes=32 * 1024 * 1024),
        )(*args)

        if L_pad > Lmax:
            lower = lower[:, :Lmax]
            upper = upper[:, :Lmax]
        # back to PyTorch NCL
        return jnp.transpose(lower, (0, 2, 1)), jnp.transpose(upper, (0, 2, 1))

    # ---- pure-JAX f32 reference (mirrors the PyTorch module, eval mode) ------

    def reference(self, x1_ncl, x2_ncl):
        p = self._ref
        x1 = jnp.transpose(x1_ncl, (0, 2, 1)).astype(jnp.float32)
        x2 = jnp.transpose(x2_ncl, (0, 2, 1)).astype(jnp.float32)
        h = x1 @ p['w1'] + p['b1']
        h = (h - p['mean']) * (p['gamma'] * jax.lax.rsqrt(p['var'] + p['eps'])) + p['beta']
        h = jnp.maximum(h, 0.0)
        p0 = h @ p['wt'][:, :, 0]
        p1 = h @ p['wt'][:, :, 1]
        p2 = h @ p['wt'][:, :, 2]
        zero = jnp.zeros_like(p0[:, :1])
        d = (p1 + jnp.concatenate([p0[:, 1:], zero], axis=1)
             + jnp.concatenate([zero, p2[:, :-1]], axis=1) + p['bt'])
        s = x2
        if self.use_maxpool:
            ninf = jnp.full_like(s[:, :1], -jnp.inf)
            s = jnp.maximum(jnp.maximum(jnp.concatenate([ninf, s[:, :-1]], axis=1), s),
                            jnp.concatenate([s[:, 1:], ninf], axis=1))
        if self.use_skip_convs:
            s = (s @ p['ws1'] + p['bs1']) @ p['ws2'] + p['bs2']
        L1, L2 = d.shape[1], s.shape[1]
        if L1 < L2:
            d = jnp.pad(d, ((0, 0), (0, L2 - L1), (0, 0)))
        elif L2 < L1:
            s = jnp.pad(s, ((0, 0), (0, L1 - L2), (0, 0)))
        u = d + s
        low = u @ p['wd2'] + p['bd2']
        return jnp.transpose(low, (0, 2, 1)), jnp.transpose(u, (0, 2, 1))


if __name__ == "__main__":
    root = jax.random.PRNGKey(0)

    def run_check(name, blk, x1, x2):
        lower, upper = blk(x1, x2)
        jax.block_until_ready((lower, upper))
        assert jnp.all(jnp.isfinite(lower)) and jnp.all(jnp.isfinite(upper)), name
        ref_lower, ref_upper = blk.reference(x1, x2)
        assert lower.shape == ref_lower.shape and upper.shape == ref_upper.shape, name
        assert jnp.allclose(lower, ref_lower, atol=5e-2, rtol=5e-2), name
        assert jnp.allclose(upper, ref_upper, atol=5e-2, rtol=5e-2), name

    # A: Cin != Cout (folded skip convs) + MaxPool, single L tile, skip input
    #    shorter than direct (in-kernel ConstantPad1d on the skip path).
    kp, k1, k2 = jax.random.split(jax.random.fold_in(root, 0), 3)
    blk = UnResBlkPallas(in_channels=4, out_channels=8,
                         n_samples_in=2000, n_samples_out=1000, key=kp)
    run_check("A", blk,
              jax.random.normal(k1, (2, 4, 16), jnp.float32),
              jax.random.normal(k2, (2, 8, 12), jnp.float32))

    # B: Cin == Cout (pool-only skip path), 3 L-tiles (halo path), direct input
    #    shorter than skip (in-kernel ConstantPad1d on the direct path).
    kp, k1, k2 = jax.random.split(jax.random.fold_in(root, 1), 3)
    blk = UnResBlkPallas(in_channels=8, out_channels=8,
                         n_samples_in=2000, n_samples_out=1000, key=kp, tile_len=16)
    run_check("B", blk,
              jax.random.normal(k1, (2, 8, 40), jnp.float32),
              jax.random.normal(k2, (2, 8, 48), jnp.float32))

    # C: skip convs without MaxPool, 4 L-tiles, equal lengths.
    kp, k1, k2 = jax.random.split(jax.random.fold_in(root, 2), 3)
    blk = UnResBlkPallas(in_channels=4, out_channels=8,
                         n_samples_in=1000, n_samples_out=1000, key=kp, tile_len=16)
    run_check("C", blk,
              jax.random.normal(k1, (2, 4, 64), jnp.float32),
              jax.random.normal(k2, (2, 8, 64), jnp.float32))

    # D: identity skip path (Cin == Cout, no downsampling).
    kp, k1, k2 = jax.random.split(jax.random.fold_in(root, 3), 3)
    blk = UnResBlkPallas(in_channels=8, out_channels=8,
                         n_samples_in=1000, n_samples_out=1000, key=kp)
    run_check("D", blk,
              jax.random.normal(k1, (2, 8, 16), jnp.float32),
              jax.random.normal(k2, (2, 8, 16), jnp.float32))

    print("KERNEL_OK")
</pallas_src>

<mosaic_0001>
module attributes {stable_mosaic.version = 11 : i64} {
  func.func @kernel(%arg0: i32, %arg1: i32, %arg2: memref<1x16x4xf32, #tpu.memory_space<vmem>>, %arg3: memref<1x16x8xf32, #tpu.memory_space<vmem>>, %arg4: memref<4x64xbf16, #tpu.memory_space<vmem>>, %arg5: memref<1x64xf32, #tpu.memory_space<vmem>>, %arg6: memref<64x24xbf16, #tpu.memory_space<vmem>>, %arg7: memref<1x8xf32, #tpu.memory_space<vmem>>, %arg8: memref<8x8xbf16, #tpu.memory_space<vmem>>, %arg9: memref<1x8xf32, #tpu.memory_space<vmem>>, %arg10: memref<8x8xbf16, #tpu.memory_space<vmem>>, %arg11: memref<1x8xf32, #tpu.memory_space<vmem>>, %arg12: memref<1x16x8xf32, #tpu.memory_space<vmem>>, %arg13: memref<1x16x8xf32, #tpu.memory_space<vmem>>) attributes {dimension_semantics = [#tpu.dimension_semantics<parallel>, #tpu.dimension_semantics<parallel>], iteration_bounds = array<i64: 2, 1>, scalar_prefetch = 0 : i64, scratch_operands = 0 : i64, tpu.core_type = #tpu.core_type<tc>, window_params = [{transform_indices = @transform_0, window_bounds = array<i64: 1, 16, 4>}, {transform_indices = @transform_1, window_bounds = array<i64: 1, 16, 8>}, {pipeline_mode = #tpu.pipeline_mode<synchronous>, transform_indices = @transform_2, window_bounds = array<i64: 4, 64>}, {pipeline_mode = #tpu.pipeline_mode<synchronous>, transform_indices = @transform_3, window_bounds = array<i64: 1, 64>}, {pipeline_mode = #tpu.pipeline_mode<synchronous>, transform_indices = @transform_4, window_bounds = array<i64: 64, 24>}, {pipeline_mode = #tpu.pipeline_mode<synchronous>, transform_indices = @transform_5, window_bounds = array<i64: 1, 8>}, {pipeline_mode = #tpu.pipeline_mode<synchronous>, transform_indices = @transform_6, window_bounds = array<i64: 8, 8>}, {pipeline_mode = #tpu.pipeline_mode<synchronous>, transform_indices = @transform_7, window_bounds = array<i64: 1, 8>}, {pipeline_mode = #tpu.pipeline_mode<synchronous>, transform_indices = @transform_8, window_bounds = array<i64: 8, 8>}, {pipeline_mode = #tpu.pipeline_mode<synchronous>, transform_indices = @transform_9, window_bounds = array<i64: 1, 8>}, {transform_indices = @transform_10, window_bounds = array<i64: 1, 16, 8>}, {transform_indices = @transform_11, window_bounds = array<i64: 1, 16, 8>}]} {
    %c16_i32 = arith.constant 16 : i32
    %0 = arith.muli %arg1, %c16_i32 : i32
    %1 = tpu.iota {dimensions = array<i32: 0>} : vector<16x1xi32>
    %2 = vector.broadcast %0 : i32 to vector<16x1xi32>
    %3 = arith.addi %2, %1 : vector<16x1xi32>
    %c0 = arith.constant 0 : index
    %c0_0 = arith.constant 0 : index
    %c0_1 = arith.constant 0 : index
    %4 = vector.load %arg2[%c0, %c0_0, %c0_1] : memref<1x16x4xf32, #tpu.memory_space<vmem>>, vector<1x16x4xf32>
    %5 = vector.shape_cast %4 : vector<1x16x4xf32> to vector<16x4xf32>
    %6 = arith.truncf %5 : vector<16x4xf32> to vector<16x4xbf16>
    %c0_2 = arith.constant 0 : index
    %c0_3 = arith.constant 0 : index
    %7 = vector.load %arg4[%c0_2, %c0_3] : memref<4x64xbf16, #tpu.memory_space<vmem>>, vector<4x64xbf16>
    %cst = arith.constant dense<0.000000e+00> : vector<16x64xf32>
    %8 = tpu.matmul %6, %7, %cst {dimension_numbers = #tpu.dot_dimension_numbers<[1], [0], [0], [1], [0, 0, 1, 1], [], []>} : vector<16x4xbf16>, vector<4x64xbf16>, vector<16x64xf32> -> vector<16x64xf32>
    %c0_4 = arith.constant 0 : index
    %c0_5 = arith.constant 0 : index
    %9 = vector.load %arg5[%c0_4, %c0_5] : memref<1x64xf32, #tpu.memory_space<vmem>>, vector<1x64xf32>
    %10 = vector.broadcast %9 : vector<1x64xf32> to vector<16x64xf32>
    %11 = arith.addf %8, %10 : vector<16x64xf32>
    %cst_6 = arith.constant 0.000000e+00 : f32
    %12 = vector.broadcast %cst_6 : f32 to vector<16x64xf32>
    %13 = arith.maximumf %11, %12 : vector<16x64xf32>
    %14 = arith.truncf %13 : vector<16x64xf32> to vector<16x64xbf16>
    %c0_7 = arith.constant 0 : index
    %c0_8 = arith.constant 0 : index
    %15 = vector.load %arg6[%c0_7, %c0_8] : memref<64x24xbf16, #tpu.memory_space<vmem>>, vector<64x24xbf16>
    %cst_9 = arith.constant dense<0.000000e+00> : vector<16x24xf32>
    %16 = tpu.matmul %14, %15, %cst_9 {dimension_numbers = #tpu.dot_dimension_numbers<[1], [0], [0], [1], [0, 0, 1, 1], [], []>} : vector<16x64xbf16>, vector<64x24xbf16>, vector<16x24xf32> -> vector<16x24xf32>
    %17 = vector.extract_strided_slice %16 {offsets = [0, 0], sizes = [16, 8], strides = [1, 1]} : vector<16x24xf32> to vector<16x8xf32>
    %18 = vector.extract_strided_slice %16 {offsets = [0, 8], sizes = [16, 8], strides = [1, 1]} : vector<16x24xf32> to vector<16x8xf32>
    %19 = vector.extract_strided_slice %16 {offsets = [0, 16], sizes = [16, 8], strides = [1, 1]} : vector<16x24xf32> to vector<16x8xf32>
    %cst_10 = arith.constant 0.000000e+00 : f32
    %20 = vector.broadcast %cst_10 : f32 to vector<1x8xf32>
    %cst_11 = arith.constant 0.000000e+00 : f32
    %21 = vector.broadcast %cst_11 : f32 to vector<1x8xf32>
    %22 = vector.extract_strided_slice %17 {offsets = [1, 0], sizes = [15, 8], strides = [1, 1]} : vector<16x8xf32> to vector<15x8xf32>
    %23 = tpu.concatenate %22, %21 in 0 : vector<15x8xf32>, vector<1x8xf32> -> vector<16x8xf32>
    %24 = vector.extract_strided_slice %19 {offsets = [0, 0], sizes = [15, 8], strides = [1, 1]} : vector<16x8xf32> to vector<15x8xf32>
    %25 = tpu.concatenate %20, %24 in 0 : vector<1x8xf32>, vector<15x8xf32> -> vector<16x8xf32>
    %26 = arith.addf %18, %23 : vector<16x8xf32>
    %27 = arith.addf %26, %25 : vector<16x8xf32>
    %c0_12 = arith.constant 0 : index
    %c0_13 = arith.constant 0 : index
    %28 = vector.load %arg7[%c0_12, %c0_13] : memref<1x8xf32, #tpu.memory_space<vmem>>, vector<1x8xf32>
    %29 = vector.broadcast %28 : vector<1x8xf32> to vector<16x8xf32>
    %30 = arith.addf %27, %29 : vector<16x8xf32>
    %c0_14 = arith.constant 0 : index
    %c0_15 = arith.constant 0 : index
    %c0_16 = arith.constant 0 : index
    %31 = vector.load %arg3[%c0_14, %c0_15, %c0_16] : memref<1x16x8xf32, #tpu.memory_space<vmem>>, vector<1x16x8xf32>
    %32 = vector.shape_cast %31 : vector<1x16x8xf32> to vector<16x8xf32>
    %c12_i32 = arith.constant 12 : i32
    %33 = vector.broadcast %c12_i32 : i32 to vector<16x1xi32>
    %34 = arith.cmpi slt, %3, %33 : vector<16x1xi32>
    %cst_17 = arith.constant 0xFF800000 : f32
    %35 = vector.shape_cast %34 : vector<16x1xi1> to vector<16x1xi1>
    %36 = vector.broadcast %35 : vector<16x1xi1> to vector<16x8xi1>
    %37 = vector.broadcast %cst_17 : f32 to vector<16x8xf32>
    %38 = arith.select %36, %32, %37 : vector<16x8xi1>, vector<16x8xf32>
    %cst_18 = arith.constant 0xFF800000 : f32
    %39 = vector.broadcast %cst_18 : f32 to vector<1x8xf32>
    %cst_19 = arith.constant 0xFF800000 : f32
    %40 = vector.broadcast %cst_19 : f32 to vector<1x8xf32>
    %41 = vector.extract_strided_slice %38 {offsets = [0, 0], sizes = [15, 8], strides = [1, 1]} : vector<16x8xf32> to vector<15x8xf32>
    %42 = tpu.concatenate %39, %41 in 0 : vector<1x8xf32>, vector<15x8xf32> -> vector<16x8xf32>
    %43 = vector.extract_strided_slice %38 {offsets = [1, 0], sizes = [15, 8], strides = [1, 1]} : vector<16x8xf32> to vector<15x8xf32>
    %44 = tpu.concatenate %43, %40 in 0 : vector<15x8xf32>, vector<1x8xf32> -> vector<16x8xf32>
    %45 = arith.maximumf %42, %38 : vector<16x8xf32>
    %46 = arith.maximumf %45, %44 : vector<16x8xf32>
    %c12_i32_20 = arith.constant 12 : i32
    %47 = vector.broadcast %c12_i32_20 : i32 to vector<16x1xi32>
    %48 = arith.cmpi slt, %3, %47 : vector<16x1xi32>
    %cst_21 = arith.constant 0.000000e+00 : f32
    %49 = vector.shape_cast %48 : vector<16x1xi1> to vector<16x1xi1>
    %50 = vector.broadcast %49 : vector<16x1xi1> to vector<16x8xi1>
    %51 = vector.broadcast %cst_21 : f32 to vector<16x8xf32>
    %52 = arith.select %50, %46, %51 : vector<16x8xi1>, vector<16x8xf32>
    %53 = arith.truncf %52 : vector<16x8xf32> to vector<16x8xbf16>
    %c0_22 = arith.constant 0 : index
    %c0_23 = arith.constant 0 : index
    %54 = vector.load %arg8[%c0_22, %c0_23] : memref<8x8xbf16, #tpu.memory_space<vmem>>, vector<8x8xbf16>
    %cst_24 = arith.constant dense<0.000000e+00> : vector<16x8xf32>
    %55 = tpu.matmul %53, %54, %cst_24 {dimension_numbers = #tpu.dot_dimension_numbers<[1], [0], [0], [1], [0, 0, 1, 1], [], []>} : vector<16x8xbf16>, vector<8x8xbf16>, vector<16x8xf32> -> vector<16x8xf32>
    %c0_25 = arith.constant 0 : index
    %c0_26 = arith.constant 0 : index
    %56 = vector.load %arg9[%c0_25, %c0_26] : memref<1x8xf32, #tpu.memory_space<vmem>>, vector<1x8xf32>
    %57 = vector.broadcast %56 : vector<1x8xf32> to vector<16x8xf32>
    %58 = arith.addf %55, %57 : vector<16x8xf32>
    %c12_i32_27 = arith.constant 12 : i32
    %59 = vector.broadcast %c12_i32_27 : i32 to vector<16x1xi32>
    %60 = arith.cmpi slt, %3, %59 : vector<16x1xi32>
    %cst_28 = arith.constant 0.000000e+00 : f32
    %61 = vector.shape_cast %60 : vector<16x1xi1> to vector<16x1xi1>
    %62 = vector.broadcast %61 : vector<16x1xi1> to vector<16x8xi1>
    %63 = vector.broadcast %cst_28 : f32 to vector<16x8xf32>
    %64 = arith.select %62, %58, %63 : vector<16x8xi1>, vector<16x8xf32>
    %65 = arith.addf %30, %64 : vector<16x8xf32>
    %66 = arith.truncf %65 : vector<16x8xf32> to vector<16x8xbf16>
    %c0_29 = arith.constant 0 : index
    %c0_30 = arith.constant 0 : index
    %67 = vector.load %arg10[%c0_29, %c0_30] : memref<8x8xbf16, #tpu.memory_space<vmem>>, vector<8x8xbf16>
    %cst_31 = arith.constant dense<0.000000e+00> : vector<16x8xf32>
    %68 = tpu.matmul %66, %67, %cst_31 {dimension_numbers = #tpu.dot_dimension_numbers<[1], [0], [0], [1], [0, 0, 1, 1], [], []>} : vector<16x8xbf16>, vector<8x8xbf16>, vector<16x8xf32> -> vector<16x8xf32>
    %c0_32 = arith.constant 0 : index
    %c0_33 = arith.constant 0 : index
    %69 = vector.load %arg11[%c0_32, %c0_33] : memref<1x8xf32, #tpu.memory_space<vmem>>, vector<1x8xf32>
    %70 = vector.broadcast %69 : vector<1x8xf32> to vector<16x8xf32>
    %71 = arith.addf %68, %70 : vector<16x8xf32>
    %c0_34 = arith.constant 0 : index
    %c0_35 = arith.constant 0 : index
    %c0_36 = arith.constant 0 : index
    %72 = vector.load %arg13[%c0_34, %c0_35, %c0_36] : memref<1x16x8xf32, #tpu.memory_space<vmem>>, vector<1x16x8xf32>
    %73 = vector.shape_cast %72 : vector<1x16x8xf32> to vector<16x8xf32>
    %74 = vector.shape_cast %65 : vector<16x8xf32> to vector<1x16x8xf32>
    tpu.vector_store %arg13[%c0_34, %c0_35, %c0_36], %74 {strides = array<i32>} : memref<1x16x8xf32, #tpu.memory_space<vmem>>, vector<1x16x8xf32>,
    %c0_37 = arith.constant 0 : index
    %c0_38 = arith.constant 0 : index
    %c0_39 = arith.constant 0 : index
    %75 = vector.load %arg12[%c0_37, %c0_38, %c0_39] : memref<1x16x8xf32, #tpu.memory_space<vmem>>, vector<1x16x8xf32>
    %76 = vector.shape_cast %75 : vector<1x16x8xf32> to vector<16x8xf32>
    %77 = vector.shape_cast %71 : vector<16x8xf32> to vector<1x16x8xf32>
    tpu.vector_store %arg12[%c0_37, %c0_38, %c0_39], %77 {strides = array<i32>} : memref<1x16x8xf32, #tpu.memory_space<vmem>>, vector<1x16x8xf32>,
    return
  }
  func.func @transform_0(%arg0: i32, %arg1: i32) -> (i32, i32, i32) {
    %c0_i32 = arith.constant 0 : i32
    %c0_i32_0 = arith.constant 0 : i32
    return %arg0, %arg1, %c0_i32 : i32, i32, i32
  }
  func.func @transform_1(%arg0: i32, %arg1: i32) -> (i32, i32, i32) {
    %c0_i32 = arith.constant 0 : i32
    %c0_i32_0 = arith.constant 0 : i32
    return %arg0, %arg1, %c0_i32 : i32, i32, i32
  }
  func.func @transform_2(%arg0: i32, %arg1: i32) -> (i32, i32) {
    %c0_i32 = arith.constant 0 : i32
    %c0_i32_0 = arith.constant 0 : i32
    %c0_i32_1 = arith.constant 0 : i32
    return %c0_i32, %c0_i32_0 : i32, i32
  }
  func.func @transform_3(%arg0: i32, %arg1: i32) -> (i32, i32) {
    %c0_i32 = arith.constant 0 : i32
    %c0_i32_0 = arith.constant 0 : i32
    %c0_i32_1 = arith.constant 0 : i32
    return %c0_i32, %c0_i32_0 : i32, i32
  }
  func.func @transform_4(%arg0: i32, %arg1: i32) -> (i32, i32) {
    %c0_i32 = arith.constant 0 : i32
    %c0_i32_0 = arith.constant 0 : i32
    %c0_i32_1 = arith.constant 0 : i32
    return %c0_i32, %c0_i32_0 : i32, i32
  }
  func.func @transform_5(%arg0: i32, %arg1: i32) -> (i32, i32) {
    %c0_i32 = arith.constant 0 : i32
    %c0_i32_0 = arith.constant 0 : i32
    %c0_i32_1 = arith.constant 0 : i32
    return %c0_i32, %c0_i32_0 : i32, i32
  }
  func.func @transform_6(%arg0: i32, %arg1: i32) -> (i32, i32) {
    %c0_i32 = arith.constant 0 : i32
    %c0_i32_0 = arith.constant 0 : i32
    %c0_i32_1 = arith.constant 0 : i32
    return %c0_i32, %c0_i32_0 : i32, i32
  }
  func.func @transform_7(%arg0: i32, %arg1: i32) -> (i32, i32) {
    %c0_i32 = arith.constant 0 : i32
    %c0_i32_0 = arith.constant 0 : i32
    %c0_i32_1 = arith.constant 0 : i32
    return %c0_i32, %c0_i32_0 : i32, i32
  }
  func.func @transform_8(%arg0: i32, %arg1: i32) -> (i32, i32) {
    %c0_i32 = arith.constant 0 : i32
    %c0_i32_0 = arith.constant 0 : i32
    %c0_i32_1 = arith.constant 0 : i32
    return %c0_i32, %c0_i32_0 : i32, i32
  }
  func.func @transform_9(%arg0: i32, %arg1: i32) -> (i32, i32) {
    %c0_i32 = arith.constant 0 : i32
    %c0_i32_0 = arith.constant 0 : i32
    %c0_i32_1 = arith.constant 0 : i32
    return %c0_i32, %c0_i32_0 : i32, i32
  }
  func.func @transform_10(%arg0: i32, %arg1: i32) -> (i32, i32, i32) {
    %c0_i32 = arith.constant 0 : i32
    %c0_i32_0 = arith.constant 0 : i32
    return %arg0, %arg1, %c0_i32 : i32, i32, i32
  }
  func.func @transform_11(%arg0: i32, %arg1: i32) -> (i32, i32, i32) {
    %c0_i32 = arith.constant 0 : i32
    %c0_i32_0 = arith.constant 0 : i32
    return %arg0, %arg1, %c0_i32 : i32, i32, i32
  }
}

</mosaic_0001>

<bundles_post_ra>
// kernel: tpu_custom_call.1
= control target key start
LH: loop header
LB: loop body
LE: loop exit
PB: predicated region body
PF: predicated region fallthrough
CT: control target
= control target key end

     0   :  { %s1201_s17 = smov 0   ;;  %s1203_s18 = smov 0   ;;  %s1302_s0 = inlined_call_operand.vmem [shape: f32[2,16,4], index: 0, kind: input, shape index: {}]   ;;  %s1303_s1 = inlined_call_operand.vmem [shape: f32[2,16,8], index: 1, kind: input, shape index: {}]   ;;  %s1304_s2 = inlined_call_operand.vmem [shape: bf16[4,64], index: 2, kind: input, shape index: {}]   ;;  %s1305_s3 = inlined_call_operand.vmem [shape: f32[1,64], index: 3, kind: input, shape index: {}]   ;;  %s1306_s4 = inlined_call_operand.vmem [shape: bf16[64,24], index: 4, kind: input, shape index: {}]   ;;  %s1307_s5 = inlined_call_operand.vmem [shape: f32[1,8], index: 5, kind: input, shape index: {}]   ;;  %s1308_s6 = inlined_call_operand.vmem [shape: bf16[8,8], index: 6, kind: input, shape index: {}]   ;;  %s1309_s7 = inlined_call_operand.vmem [shape: f32[1,8], index: 7, kind: input, shape index: {}]   ;;  %s1310_s8 = inlined_call_operand.vmem [shape: bf16[8,8], index: 8, kind: input, shape index: {}]   ;;  %s1311_s9 = inlined_call_operand.vmem [shape: f32[1,8], index: 9, kind: input, shape index: {}]   ;;  %s1312_s10 = inlined_call_operand.vmem [shape: f32[2,16,8], index: 10, kind: output, shape index: {0}]   ;;  %s1313_s11 = inlined_call_operand.vmem [shape: f32[2,16,8], index: 11, kind: output, shape index: {1}]  }
   0x1   :  { %s1205_s19 = smov 0  }
   0x2 LB: > { %s34_s20 = sadd.s32 1, %s1130_s18  ;;  %p1011_p0 = scmp.ge.s32.totalorder %s1134_s19, 1  ;;  %s1134_s19 = sphi %s1205_s19, %s22_s19   ;;  %s1130_s18 = sphi %s1203_s18, %s1315_s18   ;;  %s1126_s17 = sphi %s1201_s17, %s1314_s17  }
   0x3   : > { %p36_p1 = scmp.ge.s32.totalorder %s34_s20, 2  ;;  %p380_p2 = scmp.lt.s32.totalorder %s1134_s19, 3 }
   0x5   : > { %s1317_s20 = smov (%p36_p1, %s34_s20), 0  ;;  %p381_p3 = pnand %p1011_p0, %p380_p2 }
   0x6   : > { %p447_p4 = scmp.lt.s32.totalorder (!%p381_p3), %s1126_s17, 1  ;;  %s1138_s27 = smov (!%p381_p3), 112  }
   0x7   : > { %384 = sbr.rel (%p381_p3) target bundleno = 974 (0x3ce), region = 60  ;;  %s1140_s16 = smov (!%p381_p3), 120  }
   0xc   : > { %v497_v0 = vld [vmem:[%s1304_s2] sm:$0x3]  ;;  %vm509_vm0 = vcmask 1041408   ;;  %v1136_v1 = vmov 0.0   ;;  %vm1137_vm1 = vmmov 0   ;;  %s1319_s17 = smov (!%p447_p4, %s1126_s17), 1  ;;  %v488_v11 = vlaneseq }
   0xd   : > { %1049 = vmatprep.subr.bf16.mxu0 %v1136_v1  ;;  %v511_v2 = vsel %vm509_vm0, %v497_v0, 0  ;;  %1051 = vmatprep.mubr.msk.bf16.mxu0 %vm1137_vm1, %v1136_v1  ;;  %v1108_v3 = vld [vmem:[%s1306_s4 + $0x18] sm:$0xff]   ;;  %s1227_s25 = sshll.u32 %s1319_s17, 4  ;;  %vm505_vm2 = vcmask 31744   ;;  %v1109_v7 = vld [vmem:[%s1306_s4 + $0x10] sm:$0xff]   ;;  %v1110_v8 = vld [vmem:[%s1306_s4 + $0x8] sm:$0xff]  }
   0xe   : > { %1050 = vmatpush3.bf16.msra.mxu0 %v511_v2  ;;  %1055 = vmatprep.subr.bf16.mxu1 %v1136_v1  ;;  %s454_s28 = scalar_lea.vmem %s1302_s0, %s1227_s25  ;;  %v1111_v9 = vld [vmem:[%s1306_s4] sm:$0xff]   ;;  %s464_s21 = scalar_lea.vmem %s1303_s1, %s1227_s25  ;;  %vm724_vm3 = vcmask 1043456   ;;  %v489_v15 = vshrl.u32 %v488_v11, 7  ;;  %vm642_vm4 = vcmask 1040384   ;;  %vm636_vm6 = vcmask 1046528  }
   0xf   : > { %1063 = vmatprep.mubr.msk.bf16.mxu1 %vm1137_vm1, %v1136_v1  ;;  %1067 = vmatprep.subr.bf16.mxu0 %v1136_v1  ;;  %v494_v4 = vld [vmem:[%s454_s28] sm:$0xff]  ;;  %v495_v5 = vld [vmem:[%s454_s28 + $0x8] sm:$0xff]  ;;  %vm720_vm7 = vcmask 64512   ;;  %vm589_vm8 = vcmask 523264   ;;  %s1139_s28 = smov 8   ;;  %s484_s22 = scalar_lea.vmem %s1313_s11, %s1227_s25 }
  0x10   : > { %1056 = vmatpush3.bf16.msra.mxu1 %v1108_v3  ;;  %v496_v6 = vpack.c.bf16 %v495_v5, %v494_v4  ;;  %v712_v10 = vld [vmem:[%s1308_s6] sm:$0xf]  ;;  %v490_v16 = vadd.s32 8, %v489_v15  ;;  %v682_v17 = vld [vmem:[%s464_s21 + $0x8] sm:$0xff] }
  0x11   : > { %1057 = vmatprep.subr.bf16.mxu1 %v1136_v1  ;;  %v681_v12 = vld [vmem:[%s464_s21] sm:$0xff]  ;;  %v726_v13 = vsel %vm724_vm3, %v712_v10, 0 }
  0x12   : > { %1052 = vmatmul.mubr.msk.bf16.vlgmr.msra.gmra.mxu0 %vm505_vm2, %v496_v6  ;;  %v693_v14 = vrot.slane %v681_v12, 7  ;;  %vm684_vm5 = vcmp.lt.s32.totalorder %v490_v16, 12  ;;  %v699_v19 = vrot.slane %v681_v12, 1  ;;  %v1020_v32 = vld [vmem:[%s1305_s3] ss:$0 sm:$0xff] }
  0x13   : > { %1069 = vmatprep.mubr.msk.bf16.mxu0 %vm1137_vm1, %v1136_v1  ;;  %1068 = vmatpush3.bf16.msra.mxu0 %v726_v13  ;;  %v690_v20 = vsel %vm684_vm5, %v682_v17, -inf  ;;  %v1027_v56 = vld [vmem:[%s1307_s5] ss:$0 sm:$0xff] }
  0x14   : > { %1058 = vmatpush3.bf16.msra.mxu1 %v1109_v7  ;;  %1073 = vmatprep.subr.bf16.mxu0 %v1136_v1  ;;  %v698_v18 = vsel %vm642_vm4, -inf, %v693_v14  ;;  %v694_v21 = vrot.slane %v690_v20, 7  ;;  %v700_v22 = vrot.slane %v690_v20, 1  ;;  %v1028_v58 = vld [vmem:[%s1309_s7] ss:$0 sm:$0xff] }
  0x15   : > { %1059 = vmatprep.subr.bf16.mxu1 %v1136_v1  ;;  %v705_v23 = vmax.f32 %v698_v18, %v681_v12  ;;  %v782_v0 = vld [vmem:[%s1310_s8] sm:$0xf] }
  0x16   : > { %v695_v24 = vsel %vm642_vm4, %v693_v14, %v694_v21  ;;  %v701_v25 = vsel %vm636_vm6, %v699_v19, %v700_v22  ;;  %v704_v26 = vsel %vm636_vm6, %v700_v22, -inf  ;;  %v1030_v22 = vld [vmem:[%s1311_s9] ss:$0 sm:$0xff] }
  0x17   : > { %v706_v27 = vmax.f32 %v695_v24, %v690_v20  ;;  %v707_v28 = vmax.f32 %v705_v23, %v701_v25 }
  0x18   : > { %1060 = vmatpush3.bf16.msra.mxu1 %v1110_v8 }
  0x19   : > { %1061 = vmatprep.subr.bf16.mxu1 %v1136_v1  ;;  %v708_v29 = vmax.f32 %v706_v27, %v704_v26 }
  0x1b   : > { %v710_v30 = vsel %vm684_vm5, %v708_v29, 0.0 }
  0x1c   : > { %1062 = vmatpush3.bf16.msra.mxu1 %v1111_v9  ;;  %v711_v31 = vpack.c.bf16 %v710_v30, %v707_v28 }
  0x1e   : > { %1070 = vmatmul.mubr.msk.bf16.vlgmr.msra.gmra.mxu0 %vm720_vm7, %v711_v31 }
  0x1f   : > { %1075 = vmatprep.mubr.msk.bf16.mxu0 %vm1137_vm1, %v1136_v1  ;;  %v797_v1 = vsel %vm724_vm3, %v782_v0, 0 }
  0x20   : > { %1074 = vmatpush3.bf16.msra.mxu0 %v797_v1 }
  0xd2   : > { %v547_v33 = vpop.f32.mrf.mxu0 }
  0xd3   : > { %v548_v35 = vadd.f32 %v1020_v32, %v547_v33 }
  0xd4   : > { %v1053_v34 = vpop.f32.mrf.mxu0 }
  0xd5   : > { %v554_v39 = vmax.f32 %v548_v35, 0.0 }
  0xd6   : > { %v550_v36 = vpop.f32.mrf.mxu0 }
  0xd7   : > { %v551_v37 = vadd.f32 %v1020_v32, %v550_v36 }
  0xd8   : > { %v1054_v38 = vpop.f32.mrf.mxu0 }
  0xd9   : > { %v555_v40 = vmax.f32 %v551_v37, 0.0 }
  0xdb   : > { %v556_v41 = vpack.c.bf16 %v555_v40, %v554_v39 }
  0xdd   : > { %1064 = vmatmul.mubr.msk.bf16.vlgmr.msra.gmra.mxu1 %vm589_vm8, %v556_v41 }
  0xde   : > { %v762_v42 = vpop.f32.mrf.mxu0 }
  0xdf   : > { %v763_v2 = vadd.f32 %v1028_v58, %v762_v42 }
  0xe0   : > { %v1071_v43 = vpop.f32.mrf.mxu0 }
  0xe2   : > { %v765_v44 = vpop.f32.mrf.mxu0 }
  0xe3   : > { %v766_v59 = vadd.f32 %v1028_v58, %v765_v44 }
  0xe4   : > { %v1072_v45 = vpop.f32.mrf.mxu0 }
  0xe5   : > { %v770_v62 = vsel %vm684_vm5, %v766_v59, 0.0 }
 0x19d   : > { %v627_v46 = vpop.f32.mrf.mxu1 }
 0x19e   : > { %v643_v47 = vrot.slane %v627_v46, 7  ;;  %v637_v50 = vrot.slane %v627_v46, 1 }
 0x19f   : > { %v1065_v48 = vpop.f32.mrf.mxu1 }
 0x1a0   : > { %646 = vrot.lane.b32.xlu0 %v643_v47, %s1138_s27 }
 0x1a1   : > { %v630_v49 = vpop.f32.mrf.mxu1 }
 0x1a2   : > { %v638_v51 = vrot.slane %v630_v49, 1  ;;  %v644_v52 = vrot.slane %v630_v49, 7 }
 0x1a3   : > { %v1066_v53 = vpop.f32.mrf.mxu1 }
 0x1a4   : > { %v645_v54 = vsel %vm642_vm4, %v643_v47, %v644_v52  ;;  %v639_v55 = vsel %vm636_vm6, %v637_v50, %v638_v51  ;;  %v641_v57 = vsel %vm636_vm6, %v638_v51, 0.0 }
 0x1a5   : > { %648 = vrot.lane.b32.xlu0 %v645_v54, %s1138_s27  ;;  %653 = vrot.lane.b32.xlu1 %v639_v55, %s1139_s28 }
 0x1a9   : > { %655 = vrot.lane.b32.xlu1 %v641_v57, %s1139_s28  ;;  %676 = vrot.lane.b32.xlu0 %v1027_v56, %s1139_s28 }
 0x212   : > { %v647_v60 = vpop.permute.xlu0 %646 }
 0x213   : > { %v651_v61 = vsel %vm642_vm4, 0.0, %v647_v60 }
 0x214   : > { %662 = vrot.lane.b32.xlu0 %v651_v61, %s1139_s28 }
 0x217   : > { %v649_v63 = vpop.permute.xlu0 %648  ;;  %v654_v3 = vpop.permute.xlu1 %653 }
 0x218   : > { %664 = vrot.lane.b32.xlu1 %v649_v63, %s1139_s28  ;;  %775 = vrot.lane.b32.xlu0 %v770_v62, %s1139_s28  ;;  %v659_v7 = vadd.f32 %v654_v3, %v627_v46 }
 0x21b   : > { %v677_v4 = vpop.permute.xlu0 %676  ;;  %v656_v5 = vpop.permute.xlu1 %655 }
 0x21c   : > { %773 = vrot.lane.b32.xlu1 %v763_v2, %s1139_s28  ;;  %v660_v8 = vadd.f32 %v656_v5, %v630_v49  ;;  %s474_s28 = scalar_lea.vmem %s1312_s10, %s1227_s25 }
 0x286   : > { %v663_v6 = vpop.permute.xlu0 %662 }
 0x287   : > { %v668_v9 = vadd.f32 %v663_v6, %v659_v7 }
 0x289   : > { %v679_v13 = vadd.f32 %v677_v4, %v668_v9 }
 0x28a   : > { %v665_v10 = vpop.permute.xlu1 %664  ;;  %v776_v14 = vpop.permute.xlu0 %775 }
 0x28b   : > { %v669_v11 = vadd.f32 %v665_v10, %v660_v8 }
 0x28d   : > { %v680_v12 = vadd.f32 %v677_v4, %v669_v11 }
 0x28e   : > { %v774_v15 = vpop.permute.xlu1 %773 }
 0x28f   : > { %v780_v16 = vadd.f32 %v776_v14, %v680_v12  ;;  %v779_v17 = vadd.f32 %v774_v15, %v679_v13 }
 0x291   : > { %v781_v18 = vpack.c.bf16 %v780_v16, %v779_v17  ;;  %842 = vrot.lane.b32.xlu0 %v779_v17, %s1140_s16 }
 0x293   : > { %791 = vrot.lane.b32.xlu1 %v781_v18, %s1140_s16 }
 0x297   : > { %844 = vrot.lane.b32.xlu1 %v780_v16, %s1140_s16 }
 0x303   : > { %v843_v19 = vpop.permute.xlu0 %842 }
 0x304   : > { %848 = vst.msk [vmem:[%s484_s22] sm:$0xff] %vm720_vm7, %v843_v19 }
 0x305   : > { %v792_v20 = vpop.permute.xlu1 %791 }
 0x306   : > { %1076 = vmatmul.mubr.msk.bf16.vlgmr.msra.gmra.mxu0 %vm720_vm7, %v792_v20 }
 0x309   : > { %v845_v21 = vpop.permute.xlu1 %844 }
 0x30a   : > { %849 = vst.msk [vmem:[%s484_s22 + $0x8] sm:$0xff] %vm720_vm7, %v845_v21 }
 0x3c6   : > { %v833_v23 = vpop.f32.mrf.mxu0 }
 0x3c7   : > { %v834_v24 = vadd.f32 %v1030_v22, %v833_v23 }
 0x3c8   : > { %v1077_v25 = vpop.f32.mrf.mxu0 }
 0x3c9   : > { %850 = vst.msk [vmem:[%s474_s28] sm:$0xff] %vm720_vm7, %v834_v24 }
 0x3ca   : > { %v836_v26 = vpop.f32.mrf.mxu0 }
 0x3cb   : > { %v837_v27 = vadd.f32 %v1030_v22, %v836_v26 }
 0x3cc   : > { %v1078_v28 = vpop.f32.mrf.mxu0 }
 0x3cd   : > { %851 = vst.msk [vmem:[%s474_s28 + $0x8] sm:$0xff] %vm720_vm7, %v837_v27 }
 0x3ce PF: > { %s22_s19 = sadd.s32 1, %s1134_s19   ;;  %s1314_s17 = smov %s1130_s18 }
 0x3cf   : > { %p19_p5 = scmp.ge.s32.totalorder %s22_s19, 4   ;;  %s1315_s18 = smov %s1317_s20 }
 0x3d1   :  { %21 = sbr.rel (!%p19_p5) target bundleno = 2 (0x2), region = 105 }

</bundles_post_ra>
